<compile_context>
chip_gen: v6e
topology: v6e:2x2x1
jax: 0.10.0
libtpu: 0.0.40
codegen_flags: <defaults>
</compile_context>

<pallas_src>
import jax
import jax.numpy as jnp
from jax.experimental import pallas as pl
from jax.experimental.pallas import tpu as pltpu


def _round_up(n, m):
    return ((n + m - 1) // m) * m


# ---------------------------------------------------------------------------
# Kernels
# ---------------------------------------------------------------------------
def mlp_resident_kernel(x_ref, w1_ref, b1_ref, w2_ref, b2_ref, o_ref):
    """Whole-weight-resident fused fc1 -> ReLU -> fc2 for one batch tile."""
    h = jnp.dot(x_ref[...], w1_ref[...], preferred_element_type=jnp.float32)
    h = jnp.maximum(h + b1_ref[...], 0.0)
    out = jnp.dot(h.astype(w2_ref.dtype), w2_ref[...],
                  preferred_element_type=jnp.float32)
    o_ref[...] = (out + b2_ref[...]).astype(o_ref.dtype)


def mlp_streaming_kernel(x_ref, w1_ref, b1_ref, w2_ref, b2_ref, o_ref, acc_ref):
    """Hidden-dim streamed variant: w1/b1/w2 arrive in hid-chunks along the last
    ('arbitrary') grid axis; fc2 output is accumulated in a VMEM f32 scratch."""
    k = pl.program_id(1)

    @pl.when(k == 0)
    def _():
        acc_ref[...] = jnp.zeros_like(acc_ref)

    h = jnp.dot(x_ref[...], w1_ref[...], preferred_element_type=jnp.float32)
    h = jnp.maximum(h + b1_ref[...], 0.0)
    acc_ref[...] += jnp.dot(h.astype(w2_ref.dtype), w2_ref[...],
                            preferred_element_type=jnp.float32)

    @pl.when(k == pl.num_programs(1) - 1)
    def _():
        o_ref[...] = (acc_ref[...] + b2_ref[...]).astype(o_ref.dtype)


# ---------------------------------------------------------------------------
# Host-side wrappers
# ---------------------------------------------------------------------------
def prepare_mlp_params(w1, b1, w2, b2, *, feature_align=128):
    """Pad parameters ONCE (model-init time), not per forward call.

    w1: [input_dim, n_neurons] (pre-transposed vs torch.nn.Linear.weight)
    b1: [n_neurons] or [1, n_neurons]
    w2: [n_neurons, output_dim]
    b2: [output_dim] or [1, output_dim]

    feature_align=128 keeps every load/store lane-dense; use 256 on v6e/v7x if
    the extra few % of MXU utilization matters.
    """
    b1 = b1.reshape(1, -1)
    b2 = b2.reshape(1, -1)
    input_dim, n_neurons = w1.shape
    output_dim = w2.shape[1]

    d_in = _round_up(input_dim, feature_align)
    hid = _round_up(n_neurons, feature_align)
    d_out = _round_up(output_dim, feature_align)

    dt = w1.dtype
    w1p = jnp.zeros((d_in, hid), dt).at[:input_dim, :n_neurons].set(w1)
    b1p = jnp.zeros((1, hid), dt).at[:, :n_neurons].set(b1)
    w2p = jnp.zeros((hid, d_out), dt).at[:n_neurons, :output_dim].set(w2)
    b2p = jnp.zeros((1, d_out), dt).at[:, :output_dim].set(b2)

    return dict(w1=w1p, b1=b1p, w2=w2p, b2=b2p,
                input_dim=input_dim, n_neurons=n_neurons, output_dim=output_dim)


def _pick_hidden_chunk(hid, d_in, d_out, itemsize, budget_bytes):
    """Largest hid-chunk (multiple of 128 that divides hid) whose double-buffered
    streamed w1/b1/w2 slices fit the VMEM budget (falls back to 128)."""
    best = 128
    hk = 128
    while hk <= hid:
        if hid % hk == 0:
            chunk_bytes = 2 * itemsize * (d_in * hk + hk + hk * d_out)
            if chunk_bytes <= budget_bytes:
                best = hk
        hk += 128
    return best


def mlp_forward(x, params, *, max_single_tile=512, batch_tile=512,
                resident_limit_bytes=40 << 20):
    """x: [B, input_dim]; params: output of prepare_mlp_params()."""
    w1p, b1p, w2p, b2p = params["w1"], params["b1"], params["w2"], params["b2"]
    input_dim = params["input_dim"]
    n_neurons = params["n_neurons"]
    output_dim = params["output_dim"]

    B = x.shape[0]
    d_in, hid = w1p.shape
    d_out = w2p.shape[1]
    dt = x.dtype
    itemsize = jnp.dtype(dt).itemsize

    # --- batch tiling: >= 2 tiles whenever B >= 16 so v7x's 2 TCs both work ---
    if B <= max_single_tile:
        if B >= 16:
            bt = _round_up(-(-B // 2), 8)   # ~half the batch, sublane-aligned
        else:
            bt = _round_up(B, 8)
    else:
        bt = batch_tile
    b_pad = _round_up(B, bt)
    nb = b_pad // bt

    # --- pad the activation only if actually needed (weights padded at init) ---
    if b_pad == B and d_in == input_dim:
        xp = x
    else:
        xp = jnp.zeros((b_pad, d_in), dt).at[:B, :input_dim].set(x)

    # Advisory cost estimate from TRUE dims.
    cost = pl.CostEstimate(
        flops=2 * B * (input_dim * n_neurons + n_neurons * output_dim),
        transcendentals=0,
        bytes_accessed=itemsize * (B * input_dim + input_dim * n_neurons
                                   + n_neurons + n_neurons * output_dim
                                   + output_dim + B * output_dim))

    weight_bytes = itemsize * (d_in * hid + hid + hid * d_out + d_out)

    if weight_bytes <= resident_limit_bytes:
        # ------------------- whole-weight-resident path -------------------
        # Constant index_map + Buffered(1): weights fetched once, single copy
        # in VMEM, resident across all batch tiles.
        footprint = (weight_bytes
                     + 2 * itemsize * bt * (d_in + d_out)   # dbl-buffered x / out tiles
                     + 4 * bt * hid)                        # in-kernel f32 h temporary
        vmem_limit = int(min(max(int(1.5 * footprint) + (4 << 20), 32 << 20),
                             100 << 20))
        out_padded = pl.pallas_call(
            mlp_resident_kernel,
            out_shape=jax.ShapeDtypeStruct((b_pad, d_out), dt),
            grid_spec=pltpu.PrefetchScalarGridSpec(
                num_scalar_prefetch=0,
                grid=(nb,),
                in_specs=[
                    pl.BlockSpec((bt, d_in), lambda i: (i, 0)),
                    pl.BlockSpec((d_in, hid), lambda i: (0, 0),
                                 pipeline_mode=pl.Buffered(1)),
                    pl.BlockSpec((1, hid), lambda i: (0, 0),
                                 pipeline_mode=pl.Buffered(1)),
                    pl.BlockSpec((hid, d_out), lambda i: (0, 0),
                                 pipeline_mode=pl.Buffered(1)),
                    pl.BlockSpec((1, d_out), lambda i: (0, 0),
                                 pipeline_mode=pl.Buffered(1)),
                ],
                out_specs=pl.BlockSpec((bt, d_out), lambda i: (i, 0)),
            ),
            compiler_params=pltpu.CompilerParams(
                dimension_semantics=("parallel",),
                vmem_limit_bytes=vmem_limit),
            cost_estimate=cost,
        )(xp, w1p, b1p, w2p, b2p)
    else:
        # ------------- hidden-dim streaming path (large layers / v7x) -------
        hk = _pick_hidden_chunk(hid, d_in, d_out, itemsize, resident_limit_bytes)
        nk = hid // hk
        footprint = (2 * itemsize * (d_in * hk + hk + hk * d_out)  # streamed w1/b1/w2
                     + itemsize * d_out                            # b2 (Buffered(1))
                     + 2 * itemsize * bt * (d_in + d_out)          # x / out tiles
                     + 4 * bt * d_out                              # f32 accumulator
                     + 4 * bt * hk)                                # f32 h temporary
        vmem_limit = int(min(max(int(1.5 * footprint) + (4 << 20), 32 << 20),
                             100 << 20))
        out_padded = pl.pallas_call(
            mlp_streaming_kernel,
            out_shape=jax.ShapeDtypeStruct((b_pad, d_out), dt),
            grid_spec=pltpu.PrefetchScalarGridSpec(
                num_scalar_prefetch=0,
                grid=(nb, nk),
                in_specs=[
                    pl.BlockSpec((bt, d_in), lambda i, k: (i, 0)),
                    pl.BlockSpec((d_in, hk), lambda i, k: (0, k)),
                    pl.BlockSpec((1, hk), lambda i, k: (0, k)),
                    pl.BlockSpec((hk, d_out), lambda i, k: (k, 0)),
                    pl.BlockSpec((1, d_out), lambda i, k: (0, 0),
                                 pipeline_mode=pl.Buffered(1)),
                ],
                out_specs=pl.BlockSpec((bt, d_out), lambda i, k: (i, 0)),
                scratch_shapes=[pltpu.VMEM((bt, d_out), jnp.float32)],
            ),
            compiler_params=pltpu.CompilerParams(
                dimension_semantics=("parallel", "arbitrary"),
                vmem_limit_bytes=vmem_limit),
            cost_estimate=cost,
        )(xp, w1p, b1p, w2p, b2p)

    # Strip padding (free layout plumbing in the wrapper).
    return out_padded[:B, :output_dim]


def reference_forward(x, w1, b1, w2, b2):
    h = jnp.maximum(x @ w1 + b1, 0.0)
    return h @ w2 + b2


if __name__ == "__main__":
    key = jax.random.PRNGKey(0)
    kx, kw1, kb1, kw2, kb2 = jax.random.split(key, 5)

    # Small shapes consistent with MLPNet(input_dim=16, n_neurons=32, output_dim=8)
    batch, input_dim, n_neurons, output_dim = 64, 16, 32, 8

    x = jax.random.normal(kx, (batch, input_dim), dtype=jnp.float32)

    # Deterministic init mimicking nn.Linear's uniform(-1/sqrt(fan_in), 1/sqrt(fan_in))
    bound1 = 1.0 / (input_dim ** 0.5)
    bound2 = 1.0 / (n_neurons ** 0.5)
    w1 = jax.random.uniform(kw1, (input_dim, n_neurons), jnp.float32, -bound1, bound1)
    b1 = jax.random.uniform(kb1, (1, n_neurons), jnp.float32, -bound1, bound1)
    w2 = jax.random.uniform(kw2, (n_neurons, output_dim), jnp.float32, -bound2, bound2)
    b2 = jax.random.uniform(kb2, (1, output_dim), jnp.float32, -bound2, bound2)

    # TODO(synk): PyTorch forward/grad hooks (feature_hook, record_grad) are
    # training-time instrumentation with no kernel-level equivalent.
    params = prepare_mlp_params(w1, b1, w2, b2)     # pad once at "init" time
    out = jax.block_until_ready(mlp_forward(x, params))
    ref = reference_forward(x, w1, b1, w2, b2)
    assert out.shape == (batch, output_dim)
    assert jnp.allclose(out, ref, atol=1e-5, rtol=1e-5)

    # Also exercise the hidden-dim streaming path (what large layers / v7x hit)
    # by forcing the residency budget to zero on a slightly wider hidden layer.
    n2 = 300
    kw1b, kb1b, kw2b, kb2b = jax.random.split(kw2, 4)
    s1 = 1.0 / (input_dim ** 0.5)
    s2 = 1.0 / (n2 ** 0.5)
    w1s = jax.random.uniform(kw1b, (input_dim, n2), jnp.float32, -s1, s1)
    b1s = jax.random.uniform(kb1b, (1, n2), jnp.float32, -s1, s1)
    w2s = jax.random.uniform(kw2b, (n2, output_dim), jnp.float32, -s2, s2)
    b2s = jax.random.uniform(kb2b, (1, output_dim), jnp.float32, -s2, s2)
    params_s = prepare_mlp_params(w1s, b1s, w2s, b2s)
    out_s = jax.block_until_ready(
        mlp_forward(x, params_s, resident_limit_bytes=0))
    ref_s = reference_forward(x, w1s, b1s, w2s, b2s)
    assert jnp.allclose(out_s, ref_s, atol=1e-5, rtol=1e-5)

    print("KERNEL_OK")
</pallas_src>

<mosaic_0001>
module attributes {stable_mosaic.version = 11 : i64} {
  func.func @mlp_resident_kernel(%arg0: i32, %arg1: memref<32x128xf32, #tpu.memory_space<vmem>>, %arg2: memref<128x128xf32, #tpu.memory_space<vmem>>, %arg3: memref<1x128xf32, #tpu.memory_space<vmem>>, %arg4: memref<128x128xf32, #tpu.memory_space<vmem>>, %arg5: memref<1x128xf32, #tpu.memory_space<vmem>>, %arg6: memref<32x128xf32, #tpu.memory_space<vmem>>) attributes {dimension_semantics = [#tpu.dimension_semantics<parallel>], iteration_bounds = array<i64: 2>, scalar_prefetch = 0 : i64, scratch_operands = 0 : i64, tpu.core_type = #tpu.core_type<tc>, window_params = [{transform_indices = @transform_0, window_bounds = array<i64: 32, 128>}, {pipeline_mode = #tpu.pipeline_mode<synchronous>, transform_indices = @transform_1, window_bounds = array<i64: 128, 128>}, {pipeline_mode = #tpu.pipeline_mode<synchronous>, transform_indices = @transform_2, window_bounds = array<i64: 1, 128>}, {pipeline_mode = #tpu.pipeline_mode<synchronous>, transform_indices = @transform_3, window_bounds = array<i64: 128, 128>}, {pipeline_mode = #tpu.pipeline_mode<synchronous>, transform_indices = @transform_4, window_bounds = array<i64: 1, 128>}, {transform_indices = @transform_5, window_bounds = array<i64: 32, 128>}]} {
    %c0 = arith.constant 0 : index
    %c0_0 = arith.constant 0 : index
    %0 = vector.load %arg1[%c0, %c0_0] : memref<32x128xf32, #tpu.memory_space<vmem>>, vector<32x128xf32>
    %c0_1 = arith.constant 0 : index
    %c0_2 = arith.constant 0 : index
    %1 = vector.load %arg2[%c0_1, %c0_2] : memref<128x128xf32, #tpu.memory_space<vmem>>, vector<128x128xf32>
    %cst = arith.constant dense<0.000000e+00> : vector<32x128xf32>
    %2 = tpu.matmul %0, %1, %cst {dimension_numbers = #tpu.dot_dimension_numbers<[1], [0], [0], [1], [0, 0, 1, 1], [], []>} : vector<32x128xf32>, vector<128x128xf32>, vector<32x128xf32> -> vector<32x128xf32>
    %c0_3 = arith.constant 0 : index
    %c0_4 = arith.constant 0 : index
    %3 = vector.load %arg3[%c0_3, %c0_4] : memref<1x128xf32, #tpu.memory_space<vmem>>, vector<1x128xf32>
    %4 = vector.broadcast %3 : vector<1x128xf32> to vector<32x128xf32>
    %5 = arith.addf %2, %4 : vector<32x128xf32>
    %cst_5 = arith.constant 0.000000e+00 : f32
    %6 = vector.broadcast %cst_5 : f32 to vector<32x128xf32>
    %7 = arith.maximumf %5, %6 : vector<32x128xf32>
    %c0_6 = arith.constant 0 : index
    %c0_7 = arith.constant 0 : index
    %8 = vector.load %arg4[%c0_6, %c0_7] : memref<128x128xf32, #tpu.memory_space<vmem>>, vector<128x128xf32>
    %cst_8 = arith.constant dense<0.000000e+00> : vector<32x128xf32>
    %9 = tpu.matmul %7, %8, %cst_8 {dimension_numbers = #tpu.dot_dimension_numbers<[1], [0], [0], [1], [0, 0, 1, 1], [], []>} : vector<32x128xf32>, vector<128x128xf32>, vector<32x128xf32> -> vector<32x128xf32>
    %c0_9 = arith.constant 0 : index
    %c0_10 = arith.constant 0 : index
    %10 = vector.load %arg5[%c0_9, %c0_10] : memref<1x128xf32, #tpu.memory_space<vmem>>, vector<1x128xf32>
    %11 = vector.broadcast %10 : vector<1x128xf32> to vector<32x128xf32>
    %12 = arith.addf %9, %11 : vector<32x128xf32>
    %c0_11 = arith.constant 0 : index
    %c0_12 = arith.constant 0 : index
    %13 = vector.load %arg6[%c0_11, %c0_12] : memref<32x128xf32, #tpu.memory_space<vmem>>, vector<32x128xf32>
    tpu.vector_store %arg6[%c0_11, %c0_12], %12 {strides = array<i32>} : memref<32x128xf32, #tpu.memory_space<vmem>>, vector<32x128xf32>,
    return
  }
  func.func @transform_0(%arg0: i32) -> (i32, i32) {
    %c0_i32 = arith.constant 0 : i32
    %c0_i32_0 = arith.constant 0 : i32
    return %arg0, %c0_i32 : i32, i32
  }
  func.func @transform_1(%arg0: i32) -> (i32, i32) {
    %c0_i32 = arith.constant 0 : i32
    %c0_i32_0 = arith.constant 0 : i32
    %c0_i32_1 = arith.constant 0 : i32
    return %c0_i32, %c0_i32_0 : i32, i32
  }
  func.func @transform_2(%arg0: i32) -> (i32, i32) {
    %c0_i32 = arith.constant 0 : i32
    %c0_i32_0 = arith.constant 0 : i32
    %c0_i32_1 = arith.constant 0 : i32
    return %c0_i32, %c0_i32_0 : i32, i32
  }
  func.func @transform_3(%arg0: i32) -> (i32, i32) {
    %c0_i32 = arith.constant 0 : i32
    %c0_i32_0 = arith.constant 0 : i32
    %c0_i32_1 = arith.constant 0 : i32
    return %c0_i32, %c0_i32_0 : i32, i32
  }
  func.func @transform_4(%arg0: i32) -> (i32, i32) {
    %c0_i32 = arith.constant 0 : i32
    %c0_i32_0 = arith.constant 0 : i32
    %c0_i32_1 = arith.constant 0 : i32
    return %c0_i32, %c0_i32_0 : i32, i32
  }
  func.func @transform_5(%arg0: i32) -> (i32, i32) {
    %c0_i32 = arith.constant 0 : i32
    %c0_i32_0 = arith.constant 0 : i32
    return %arg0, %c0_i32 : i32, i32
  }
}

</mosaic_0001>

<bundles_post_ra>
// kernel: tpu_custom_call.1
= control target key start
LH: loop header
LB: loop body
LE: loop exit
PB: predicated region body
PF: predicated region fallthrough
CT: control target
= control target key end

     0   :  { %10 = vsyncpa [#allocation3], 0  ;;  %s1218_s0 = inlined_call_operand.hbm [shape: f32[64,128], index: 0, kind: input, shape index: {}]   ;;  %s1219_s1 = inlined_call_operand.hbm [shape: f32[128,128], index: 1, kind: input, shape index: {}]   ;;  %s1220_s2 = inlined_call_operand.vmem [shape: f32[1,128], index: 2, kind: input, shape index: {}]   ;;  %s1221_s3 = inlined_call_operand.hbm [shape: f32[128,128], index: 3, kind: input, shape index: {}]   ;;  %s1222_s4 = inlined_call_operand.vmem [shape: f32[1,128], index: 4, kind: input, shape index: {}]   ;;  %s1223_s5 = inlined_call_operand.hbm [shape: f32[64,128], index: 5, kind: output, shape index: {}]  }
   0x1   :  { %12 = vsyncpa [#allocation3 + $0x1], 0 }
   0x2   :  { %13 = vsyncpa [#allocation6], 0 }
   0x3   :  { %14 = vsyncpa [#allocation4], 0 }
   0x4   :  { %16 = vsyncpa [#allocation4 + $0x1], 0  ;;  %s1005_s18 = smov 0   ;;  %s1007_s19 = smov 0  }
   0x5   :  { %s1009_s20 = smov 0   ;;  %s1011_s21 = smov 0  }
   0x6 LB: > { %s1026_s22 = sadd.s32 4294967295, %s965_s21   ;;  %s608_s23 = sadd.s32 4294967294, %s965_s21   ;;  %s965_s21 = sphi %s1011_s21, %s1246_s21   ;;  %s961_s20 = sphi %s1009_s20, %s1245_s20   ;;  %s957_s19 = sphi %s1007_s19, %s1244_s19   ;;  %s953_s18 = sphi %s1005_s18, %s1243_s18  }
   0x7   : > { %p42_p0 = scmp.ne.s32.totalorder %s957_s19, %s953_s18  ;;  %p1224_p1 = scmp.eq.s32.totalorder %s1026_s22, 0 }
   0x8   : > { %p150_p2 = scmp.eq.s32.totalorder %s1026_s22, 1  ;;  %p156_p3 = scmp.eq.s32.totalorder %s608_s23, 1 }
   0x9   : > { %p1035_p4 = por %p1224_p1, %p42_p0  ;;  %p609_p5 = scmp.ge.s32.totalorder %s965_s21, 1 }
   0xa   : > { %p1040_p6 = por %p156_p3, %p42_p0  ;;  %p163_p7 = scmp.lt.s32.totalorder %s965_s21, 3 }
   0xb   : > { %s1229_s24 = scalar_select %p1035_p4, 1, 0 }
   0xc   : > { %s1230_s25 = scalar_select %p1040_p6, 1, 0 }
   0xd   : > { %p1045_p8 = pnand %p609_p5, %p163_p7  ;;  %s967_s27 = smov [#allocation5]  }
   0xe   : > { %s175_s28 = sshll.u32 %s967_s27, 4  ;;  %s968_s30 = smov [#allocation7]   ;;  %s176_s28 = int_to_ptr.vmem [resolvable:$true] %s175_s28 }
   0xf   : > { %s1231_s26 = scalar_select %p1045_p8, 1, 0 }
  0x10   : > { %p758_p9 = pneg %p1045_p8  ;;  %s191_s6 = sshll.u32 %s968_s30, 4  ;;  %s192_s6 = int_to_ptr.vmem [resolvable:$true] %s191_s6 }
  0x11   : > { %s828_s7 = scalar_lea.vmem %s176_s28, 2048  ;;  %p836_p5 = scmp.lt.s32.totalorder %s176_s28, %s176_s28 }
  0x12   : > { %p1054_p11 = pnand %p758_p9, %p1224_p1  ;;  %p829_p13 = scmp.ne.s32.totalorder %s176_s28, %s828_s7 }
  0x13   : > { %p837_p7 = scmp.lt.s32.totalorder %s828_s7, %s828_s7 }
  0x14   : > { %p819_p12 = pneg %p1054_p11 }
  0x15   : > { %p838_p10 = por %p837_p7, %p836_p5 }
  0x16   : > { %p831_p0 = pnand %p829_p13, %p819_p12 }
  0x18   : > { %p832_p3 = pneg %p831_p0 }
  0x1a   : > { %p839_p9 = pnand %p838_p10, %p832_p3 }
  0x1c   : > { %842 = shalt.err (!%p839_p9)
}
  0x1d   : > { %s1225_s8 = smov 128   ;;  %s970_s9 = smov 8  }
  0x1e   : > { %761 = dma.hbm_to_vmem [thread:$0]  (!%p1054_p11), %s1219_s1, 2048, %s176_s28, [#allocation6], %s1225_s8, %s1225_s8, %s970_s9  }
  0x1f   : > { %s854_s12 = scalar_lea.vmem %s192_s6, 2048  ;;  %p862_p10 = scmp.lt.s32.totalorder %s192_s6, %s192_s6 }
  0x20   : > { %p855_p13 = scmp.ne.s32.totalorder %s192_s6, %s854_s12  ;;  %p863_p3 = scmp.lt.s32.totalorder %s854_s12, %s854_s12 }
  0x22   : > { %p857_p0 = pnand %p855_p13, %p819_p12  ;;  %p864_p7 = por %p863_p3, %p862_p10 }
  0x24   : > { %p858_p5 = pneg %p857_p0 }
  0x26   : > { %p865_p9 = pnand %p864_p7, %p858_p5 }
  0x28   : > { %868 = shalt.err (!%p865_p9)
}
  0x29   : > { %764 = dma.hbm_to_vmem [thread:$0]  (!%p1054_p11), %s1221_s3, 2048, %s192_s6, [#allocation6], %s1225_s8, %s1225_s8, %s970_s9  }
  0x2a   : > { %s1083_s15 = sadd.s32 1, %s965_s21   ;;  %s29_s16 = sadd.s32 1, %s961_s20 }
  0x2b   : > { %s26_s17 = ssub.s32 %s965_s21, %s1083_s15  ;;  %p36_p12 = scmp.ne.s32.totalorder %s961_s20, %s957_s19 }
  0x2c   : > { %p27_p13 = scmp.eq.s32.totalorder %s26_s17, 0  ;;  %p37_p0 = scmp.eq.s32.totalorder %s965_s21, 0 }
  0x2d   : > { %p1093_p5 = por %p150_p2, %p36_p12  ;;  %p775_p10 = scmp.lt.s32.totalorder %s965_s21, 2 }
  0x2e   : > { %s1099_s27 = scalar_select %p27_p13, %s961_s20, %s29_s16  }
  0x2f   : > { %s1233_s23 = scalar_select %p1093_p5, 1, 0 }
  0x30   : > { %p38_p3 = por %p37_p0, %p36_p12  ;;  %s208_s28 = sand.u32 1, %s961_s20  }
  0x31   : > { %s613_s29 = sshll.u32 %s208_s28, 5  ;;  %s628_s30 = sshll.u32 %s965_s21, 9 }
  0x32   : > { %s1106_s10 = scalar_lea.hbm %s1218_s0, %s628_s30  ;;  %s212_s11 = scalar_lea.vmem [#allocation2], %s613_s29 }
  0x33   : > { %s219_s12 = sshll.u32 %s212_s11, 4  ;;  %p1110_p2 = pnand %p775_p10, %p38_p3  ;;  %s1108_s12 = int_to_ptr.vmem [resolvable:$true] %s219_s12 }
  0x34   : > { %s1114_s14 = scalar_lea.sflag [#allocation3], %s208_s28  ;;  %s869_s16 = scalar_lea.hbm %s1106_s10, 512 }
  0x35   : > { %p870_p11 = scmp.ne.s32.totalorder %s1106_s10, %s869_s16  ;;  %p871_p7 = pneg %p1110_p2 }
  0x36   : > { %s874_s29 = scalar_lea.hbm %s1218_s0, 1024  ;;  %p875_p13 = scmp.lt.s32.totalorder %s1106_s10, %s1218_s0 }
  0x37   : > { %p872_p9 = pnand %p871_p7, %p870_p11  ;;  %p876_p0 = scmp.lt.s32.totalorder %s874_s29, %s869_s16 }
  0x39   : > { %p873_p12 = pneg %p872_p9  ;;  %p877_p10 = por %p876_p0, %p875_p13 }
  0x3b   : > { %p878_p3 = pnand %p877_p10, %p873_p12 }
  0x3d   : > { %881 = shalt.err (!%p878_p3)
}
  0x3e   : > { %s882_s28 = scalar_lea.vmem %s1108_s12, 512  ;;  %s971_s11 = smov [#allocation2]  }
  0x3f   : > { %p883_p1 = scmp.ne.s32.totalorder %s1108_s12, %s882_s28  ;;  %s887_s8 = sshll.u32 %s971_s11, 4  ;;  %s888_s8 = int_to_ptr.vmem [resolvable:$false] %s887_s8 }
  0x40   : > { %s889_s17 = scalar_lea.vmem %s888_s8, 1024  ;;  %p890_p9 = scmp.lt.s32.totalorder %s1108_s12, %s888_s8 }
  0x41   : > { %p885_p6 = pnand %p883_p1, %p871_p7  ;;  %p891_p5 = scmp.lt.s32.totalorder %s889_s17, %s882_s28 }
  0x43   : > { %p886_p11 = pneg %p885_p6  ;;  %p892_p4 = por %p891_p5, %p890_p9 }
  0x45   : > { %p893_p8 = pnand %p892_p4, %p886_p11 }
  0x47   : > { %896 = shalt.err (!%p893_p8)
}
  0x48   : > { %s1235_s16 = smov 128   ;;  %p1236_p1 = scmp.ne.s32.totalorder %s1231_s26, 0 }
  0x49   : > { %768 = dma.hbm_to_vmem [thread:$0]  (!%p1110_p2), %s1106_s10, 512, %s1108_s12, %s1114_s14, %s1235_s16, %s1235_s16, %s970_s9  }
  0x4a   : > { %231 = sbr.rel (%p1236_p1) target bundleno = 531 (0x213), region = 40  ;;  %s1141_s30 = sand.u32 (!%p1236_p1), 1, %s957_s19  }
  0x4b   : > { %s617_s8 = sshll.u32 (!%p1236_p1), %s1141_s30, 5  ;;  %s234_s29 = scalar_lea.sflag (!%p1236_p1), [#allocation3], %s1141_s30 }
  0x4c   : > { %s1147_s13 = scalar_lea.vmem (!%p1236_p1), [#allocation2], %s617_s8  ;;  %p1237_p4 = scmp.ne.s32.totalorder (!%p1236_p1), %s1229_s24, 0 }
  0x4f   : > { %940 = dma.done.wait (%p1237_p4), %s234_s29, 512  }
  0x50   : > { %942 = vsyncadd (%p1237_p4), %s234_s29, 4294966784  ;;  %p1238_p6 = scmp.eq.s32.totalorder %s1026_s22, 0 }
  0x52   : > { %944 = dma.done.wait (%p1238_p6), [#allocation6], 4096   ;;  %p1239_p8 = pmov %p1238_p6 }
  0x53   : > { %v293_v0 = vld [vmem:[#allocation5 + $0x78] sm:$0xff]  ;;  %v292_v1 = vld [vmem:[#allocation5 + $0x70] sm:$0xff]  ;;  %v291_v2 = vld [vmem:[#allocation5 + $0x68] sm:$0xff]  ;;  %s271_s12 = scalar_lea.vmem [#allocation8], %s617_s8  ;;  %s629_s6 = sshll.u32 %s1026_s22, 9 }
  0x54   : > { %946 = vsyncadd (%p1239_p8), [#allocation6], 4294963200  ;;  %670 = vmatprep.subr.mxu0 %v293_v0  ;;  %v290_v3 = vld [vmem:[#allocation5 + $0x60] sm:$0xff]  ;;  %v289_v5 = vld [vmem:[#allocation5 + $0x58] sm:$0xff]  ;;  %s516_s14 = sshll.u32 %s271_s12, 4  ;;  %s1175_s11 = scalar_lea.hbm %s1223_s5, %s629_s6  ;;  %s1170_s14 = int_to_ptr.vmem [resolvable:$true] %s516_s14 }
  0x55   : > { %671 = vmatpush3.msra.mxu0 %v293_v0  ;;  %v274_v4 = vld [vmem:[%s1147_s13] sm:$0xff]  ;;  %v405_v6 = vld [vmem:[#allocation7 + $0x78] sm:$0xff]  ;;  %v404_v7 = vld [vmem:[#allocation7 + $0x70] sm:$0xff]  ;;  %s503_s17 = scalar_lea.sflag [#allocation4], %s1141_s30  ;;  %s897_s16 = scalar_lea.vmem %s1170_s14, 512 }
  0x56   : > { %672 = vmatprep.subr.mxu0 %v292_v1  ;;  %702 = vmatprep.mubr.f32.mxu0 %v274_v4  ;;  %v288_v8 = vld [vmem:[#allocation5 + $0x50] sm:$0xff]  ;;  %v403_v9 = vld [vmem:[#allocation7 + $0x68] sm:$0xff]  ;;  %v402_v11 = vld [vmem:[#allocation7 + $0x60] sm:$0xff]  ;;  %p898_p5 = scmp.ne.s32.totalorder %s1170_s14, %s897_s16  ;;  %p1240_p2 = scmp.ne.s32.totalorder %s1233_s23, 0 }
  0x57   : > { %673 = vmatpush3.msra.mxu0 %v292_v1  ;;  %708 = vmatprep.subr.mxu1 %v405_v6  ;;  %v287_v10 = vld [vmem:[#allocation5 + $0x48] sm:$0xff]  ;;  %v286_v12 = vld [vmem:[#allocation5 + $0x40] sm:$0xff]  ;;  %v401_v13 = vld [vmem:[#allocation7 + $0x58] sm:$0xff]  ;;  %s972_s22 = smov [#allocation8]  }
  0x58   : > { %674 = vmatprep.subr.mxu0 %v291_v2  ;;  %709 = vmatpush3.msra.mxu1 %v405_v6  ;;  %v285_v14 = vld [vmem:[#allocation5 + $0x38] sm:$0xff]  ;;  %v400_v15 = vld [vmem:[#allocation7 + $0x50] sm:$0xff]  ;;  %v399_v17 = vld [vmem:[#allocation7 + $0x48] sm:$0xff]  ;;  %p899_p7 = pnand %p898_p5, %p1240_p2  ;;  %s901_s8 = sshll.u32 %s972_s22, 4  ;;  %s902_s8 = int_to_ptr.vmem [resolvable:$false] %s901_s8 }
  0x59   : > { %675 = vmatpush3.msra.mxu0 %v291_v2  ;;  %710 = vmatprep.subr.mxu1 %v404_v7  ;;  %v284_v16 = vld [vmem:[#allocation5 + $0x30] sm:$0xff]  ;;  %v283_v18 = vld [vmem:[#allocation5 + $0x28] sm:$0xff]  ;;  %v398_v19 = vld [vmem:[#allocation7 + $0x40] sm:$0xff]  ;;  %s903_s29 = scalar_lea.vmem %s902_s8, 1024  ;;  %p904_p13 = scmp.lt.s32.totalorder %s1170_s14, %s902_s8 }
  0x5a   : > { %676 = vmatprep.subr.mxu0 %v290_v3  ;;  %711 = vmatpush3.msra.mxu1 %v404_v7  ;;  %v282_v20 = vld [vmem:[#allocation5 + $0x20] sm:$0xff]  ;;  %v397_v21 = vld [vmem:[#allocation7 + $0x38] sm:$0xff]  ;;  %v396_v23 = vld [vmem:[#allocation7 + $0x30] sm:$0xff]  ;;  %p900_p12 = pneg %p899_p7  ;;  %p905_p0 = scmp.lt.s32.totalorder %s903_s29, %s897_s16 }
  0x5b   : > { %677 = vmatpush3.msra.mxu0 %v290_v3  ;;  %712 = vmatprep.subr.mxu1 %v403_v9  ;;  %v281_v22 = vld [vmem:[#allocation5 + $0x18] sm:$0xff]  ;;  %v280_v24 = vld [vmem:[#allocation5 + $0x10] sm:$0xff]  ;;  %v395_v25 = vld [vmem:[#allocation7 + $0x28] sm:$0xff] }
  0x5c   : > { %678 = vmatprep.subr.mxu0 %v289_v5  ;;  %713 = vmatpush3.msra.mxu1 %v403_v9  ;;  %v279_v26 = vld [vmem:[#allocation5 + $0x8] sm:$0xff]  ;;  %v394_v27 = vld [vmem:[#allocation7 + $0x20] sm:$0xff]  ;;  %v276_v30 = vld [vmem:[%s1147_s13 + $0x10] sm:$0xff]  ;;  %p906_p10 = por %p905_p0, %p904_p13 }
  0x5d   : > { %679 = vmatpush3.msra.mxu0 %v289_v5  ;;  %714 = vmatprep.subr.mxu1 %v402_v11  ;;  %v278_v28 = vld [vmem:[#allocation5] sm:$0xff]  ;;  %v275_v29 = vld [vmem:[%s1147_s13 + $0x8] sm:$0xff]  ;;  %v277_v31 = vld [vmem:[%s1147_s13 + $0x18] sm:$0xff] }
  0x5e   : > { %680 = vmatprep.subr.mxu0 %v288_v8  ;;  %715 = vmatpush3.msra.mxu1 %v402_v11  ;;  %v393_v32 = vld [vmem:[#allocation7 + $0x18] sm:$0xff]  ;;  %v392_v33 = vld [vmem:[#allocation7 + $0x10] sm:$0xff]  ;;  %v391_v34 = vld [vmem:[#allocation7 + $0x8] sm:$0xff]  ;;  %p907_p3 = pnand %p906_p10, %p900_p12 }
  0x5f   : > { %681 = vmatpush3.msra.mxu0 %v288_v8  ;;  %716 = vmatprep.subr.mxu1 %v401_v13  ;;  %v390_v35 = vld [vmem:[#allocation7] sm:$0xff] }
  0x60   : > { %682 = vmatprep.subr.mxu0 %v287_v10  ;;  %717 = vmatpush3.msra.mxu1 %v401_v13  ;;  %v621_v36 = vld [vmem:[%s1220_s2] ss:$0 sm:$0xff] }
  0x61   : > { %683 = vmatpush3.msra.mxu0 %v287_v10  ;;  %718 = vmatprep.subr.mxu1 %v400_v15  ;;  %v622_v49 = vld [vmem:[%s1222_s4] ss:$0 sm:$0xff] }
  0x62   : > { %684 = vmatprep.subr.mxu0 %v286_v12  ;;  %719 = vmatpush3.msra.mxu1 %v400_v15 }
  0x63   : > { %685 = vmatpush3.msra.mxu0 %v286_v12  ;;  %720 = vmatprep.subr.mxu1 %v399_v17 }
  0x64   : > { %686 = vmatprep.subr.mxu0 %v285_v14  ;;  %721 = vmatpush3.msra.mxu1 %v399_v17 }
  0x65   : > { %687 = vmatpush3.msra.mxu0 %v285_v14  ;;  %722 = vmatprep.subr.mxu1 %v398_v19 }
  0x66   : > { %688 = vmatprep.subr.mxu0 %v284_v16  ;;  %723 = vmatpush3.msra.mxu1 %v398_v19 }
  0x67   : > { %689 = vmatpush3.msra.mxu0 %v284_v16  ;;  %724 = vmatprep.subr.mxu1 %v397_v21 }
  0x68   : > { %690 = vmatprep.subr.mxu0 %v283_v18  ;;  %725 = vmatpush3.msra.mxu1 %v397_v21 }
  0x69   : > { %691 = vmatpush3.msra.mxu0 %v283_v18  ;;  %726 = vmatprep.subr.mxu1 %v396_v23 }
  0x6a   : > { %692 = vmatprep.subr.mxu0 %v282_v20  ;;  %727 = vmatpush3.msra.mxu1 %v396_v23 }
  0x6b   : > { %693 = vmatpush3.msra.mxu0 %v282_v20  ;;  %728 = vmatprep.subr.mxu1 %v395_v25 }
  0x6c   : > { %694 = vmatprep.subr.mxu0 %v281_v22  ;;  %729 = vmatpush3.msra.mxu1 %v395_v25 }
  0x6d   : > { %695 = vmatpush3.msra.mxu0 %v281_v22  ;;  %730 = vmatprep.subr.mxu1 %v394_v27 }
  0x6e   : > { %696 = vmatprep.subr.mxu0 %v280_v24  ;;  %731 = vmatpush3.msra.mxu1 %v394_v27 }
  0x6f   : > { %697 = vmatpush3.msra.mxu0 %v280_v24  ;;  %732 = vmatprep.subr.mxu1 %v393_v32 }
  0x70   : > { %698 = vmatprep.subr.mxu0 %v279_v26  ;;  %733 = vmatpush3.msra.mxu1 %v393_v32 }
  0x71   : > { %699 = vmatpush3.msra.mxu0 %v279_v26  ;;  %734 = vmatprep.subr.mxu1 %v392_v33 }
  0x72   : > { %700 = vmatprep.subr.mxu0 %v278_v28  ;;  %735 = vmatpush3.msra.mxu1 %v392_v33 }
  0x73   : > { %701 = vmatpush3.msra.mxu0 %v278_v28  ;;  %736 = vmatprep.subr.mxu1 %v391_v34 }
  0x74   : > { %703 = vmatmul.mubr.f32.vlgmr.msra.gmra.mxu0 %v275_v29  ;;  %737 = vmatpush3.msra.mxu1 %v391_v34 }
  0x75   : > { %705 = vmatprep.mubr.f32.mxu0 %v276_v30  ;;  %738 = vmatprep.subr.mxu1 %v390_v35 }
  0x76   : > { %739 = vmatpush3.msra.mxu1 %v390_v35 }
  0x78   : > { %706 = vmatmul.mubr.f32.gmra.mxu0 %v277_v31 }
 0x134   : > { %v704_v37 = vpop.f32.mrf.mxu0 }
 0x135   : > { %v373_v38 = vadd.f32 %v704_v37, %v621_v36 }
 0x136   : > { %v367_v39 = vpop.f32.mrf.mxu0 }
 0x137   : > { %v368_v40 = vadd.f32 %v621_v36, %v367_v39  ;;  %v387_v43 = vmax.f32 %v373_v38, 0.0 }
 0x138   : > { %v707_v41 = vpop.f32.mrf.mxu0 }
 0x139   : > { %v386_v42 = vmax.f32 %v368_v40, 0.0  ;;  %v383_v44 = vadd.f32 %v707_v41, %v621_v36 }
 0x13a   : > { %v377_v45 = vpop.f32.mrf.mxu0 }
 0x13b   : > { %v378_v46 = vadd.f32 %v621_v36, %v377_v45  ;;  %740 = vmatprep.mubr.f32.mxu1 %v386_v42  ;;  %v389_v48 = vmax.f32 %v383_v44, 0.0 }
 0x13c   : > { %741 = vmatmul.mubr.f32.vlgmr.msra.gmra.mxu1 %v387_v43 }
 0x13d   : > { %v388_v47 = vmax.f32 %v378_v46, 0.0 }
 0x13f   : > { %743 = vmatprep.mubr.f32.mxu1 %v388_v47 }
 0x140   : > { %744 = vmatmul.mubr.f32.gmra.mxu1 %v389_v48 }
 0x1fc   : > { %v742_v50 = vpop.f32.mrf.mxu1 }
 0x1fd   : > { %v485_v51 = vadd.f32 %v742_v50, %v622_v49 }
 0x1fe   : > { %v479_v52 = vpop.f32.mrf.mxu1 }
 0x1ff   : > { %499 = vst [vmem:[%s271_s12 + $0x8] sm:$0xff] %v485_v51  ;;  %v480_v53 = vadd.f32 %v622_v49, %v479_v52 }
 0x200   : > { %v745_v54 = vpop.f32.mrf.mxu1 }
 0x201   : > { %498 = vst [vmem:[%s271_s12] sm:$0xff] %v480_v53  ;;  %v495_v55 = vadd.f32 %v745_v54, %v622_v49 }
 0x202   : > { %v489_v56 = vpop.f32.mrf.mxu1 }
 0x203   : > { %501 = vst [vmem:[%s271_s12 + $0x18] sm:$0xff] %v495_v55  ;;  %v490_v57 = vadd.f32 %v622_v49, %v489_v56 }
 0x205   : > { %500 = vst [vmem:[%s271_s12 + $0x10] sm:$0xff] %v490_v57 }
 0x206   : > { %910 = shalt.err (!%p907_p3)
}
 0x207   : > { %s911_s13 = scalar_lea.hbm %s1175_s11, 512  ;;  %s915_s9 = scalar_lea.hbm %s1223_s5, 1024 }
 0x208   : > { %p912_p11 = scmp.ne.s32.totalorder %s1175_s11, %s911_s13  ;;  %p916_p4 = scmp.lt.s32.totalorder %s1175_s11, %s1223_s5 }
 0x209   : > { %p917_p6 = scmp.lt.s32.totalorder %s915_s9, %s911_s13 }
 0x20a   : > { %p913_p9 = pnand %p912_p11, %p1240_p2 }
 0x20b   : > { %p918_p8 = por %p917_p6, %p916_p4 }
 0x20c   : > { %p914_p1 = pneg %p913_p9 }
 0x20e   : > { %p919_p5 = pnand %p918_p8, %p914_p1 }
 0x210   : > { %922 = shalt.err (!%p919_p5)
}
 0x211   : > { %s973_s6 = smov 128   ;;  %s974_s7 = smov 8  }
 0x212   : > { %756 = dma.vmem_to_hbm [thread:$0]  (%p1240_p2), %s1170_s14, 512, %s1175_s11, %s503_s17, %s973_s6, %s973_s6, %s974_s7  }
 0x213 PF: > { %s531_s28 = sand.u32 1, %s953_s18   ;;  %p1241_p7 = scmp.ne.s32.totalorder %s1230_s25, 0 }
 0x214   : > { %p1242_p12 = scmp.ge.s32.totalorder %s965_s21, 2  ;;  %s532_s16 = scalar_lea.sflag [#allocation4], %s531_s28 }
 0x216   : > { %p770_p13 = pnand %p1242_p12, %p1241_p7 }
 0x218   : > { %p771_p0 = pneg %p770_p13 }
 0x21a   : > { %948 = dma.done.wait (%p771_p0), %s532_s16, 512  }
 0x21b   : > { %950 = vsyncadd (%p771_p0), %s532_s16, 4294966784  ;;  %p19_p10 = scmp.ge.s32.totalorder %s1083_s15, 4   ;;  %s1243_s18 = smov %s957_s19 }
 0x21c   : > { %s1244_s19 = smov %s961_s20  ;;  %s1245_s20 = smov %s1099_s27 }
 0x21d   : > { %s1246_s21 = smov %s1083_s15  ;;  %21 = sbr.rel (!%p19_p10) target bundleno = 6 (0x6), region = 93 }
 0x222   :  { %537 = vsyncpa [#allocation3], 1 }
 0x223   :  { %539 = vsyncpa [#allocation3 + $0x1], 1 }
 0x224   :  { %540 = vsyncpa [#allocation6], 1 }
 0x225   :  { %541 = vsyncpa [#allocation4], 1 }
 0x226   :  { %543 = vsyncpa [#allocation4 + $0x1], 1 }

</bundles_post_ra>
